<compile_context>
chip_gen: v5e
topology: v5e:2x2
jax: 0.10.0
libtpu: 0.0.40
codegen_flags: <defaults>
</compile_context>

<pallas_src>
import functools

import jax
import jax.numpy as jnp
from jax import lax
from jax.experimental import pallas as pl
from jax.experimental.pallas import tpu as pltpu

BN_EPS = 1e-5
LANE = 128
SUBLANE = 8


def _round_up(x, m):
    return (x + m - 1) // m * m


# ----------------------------------------------------------------------------
# Pass 1: tiled matmul over M rows -> per-tile per-channel sum / sum-of-squares.
# Stats only -- the conv tile is recomputed (fused with BN+ReLU) in pass 2, so
# the 128-padded conv intermediate never touches HBM.
# ----------------------------------------------------------------------------
def _conv_stats_kernel(p_ref, w_ref, stats_ref):
    # p_ref     : (tm, kkc_pad)     lane-dense im2col patch rows (zero padded)
    # w_ref     : (kkc_pad, cout_p) weight matrix (block index constant -> resident)
    # stats_ref : (1, 2, cout_p)    [sum, sum of squares] for this row tile
    conv = jnp.dot(p_ref[...], w_ref[...],
                   preferred_element_type=jnp.float32)          # (tm, cout_p)
    stats_ref[0, 0:1, :] = jnp.sum(conv, axis=0, keepdims=True)
    stats_ref[0, 1:2, :] = jnp.sum(conv * conv, axis=0, keepdims=True)


# ----------------------------------------------------------------------------
# Pass 2: recompute the conv tile, fuse per-channel affine (folded BN) + ReLU.
# ----------------------------------------------------------------------------
def _conv_affine_relu_kernel(p_ref, w_ref, ss_ref, o_ref, *, apply_relu):
    # ss_ref: (2, cout_p) packed [scale; shift] in f32
    conv = jnp.dot(p_ref[...], w_ref[...],
                   preferred_element_type=jnp.float32)          # (tm, cout_p)
    out = conv * ss_ref[0:1, :] + ss_ref[1:2, :]
    if apply_relu:
        out = jnp.maximum(out, 0.0)
    o_ref[...] = out.astype(o_ref.dtype)


def conv_bn_relu(x, weight, bias, gamma, beta, *, apply_relu=True,
                 compute_dtype=jnp.bfloat16, row_tile=1024):
    """x: (N, Cin, H, W); weight: (Cout, Cin, K, K); returns (N, Cout, Hout, Wout).

    Conv2d(stride=1, pad=(k-1)//2) -> BatchNorm2d (training-mode batch stats)
    -> optional ReLU.  `bias` is accepted for interface parity but unused: a
    conv bias is exactly cancelled by the BatchNorm mean subtraction.
    """
    del bias  # algebraically cancelled by BN mean subtraction
    n, cin, h, w = x.shape
    cout, _, k, _ = weight.shape
    pad = (k - 1) // 2
    hout = h + 2 * pad - k + 1
    wout = w + 2 * pad - k + 1
    m = n * hout * wout
    kkc = k * k * cin
    kkc_pad = _round_up(max(kkc, LANE), LANE)
    cout_p = _round_up(max(cout, LANE), LANE)

    # Row tile: bounded VMEM per step, multiple of 8, M zero-padded to a multiple.
    tm = _round_up(min(row_tile, _round_up(m, SUBLANE)), SUBLANE)
    m_pad = _round_up(m, tm)
    n_tiles = m_pad // tm

    # --- wrapper-side im2col (lane-dense).  Cin is small for this module, so
    # the K^2 blow-up of the input is cheap and buys dense contiguous DMAs plus
    # a plain tiled matmul in both passes (no in-kernel concat/reshape copies).
    # TODO(synk): for Cin >~ 128 prefer in-kernel K^2 tap-accumulated matmuls
    # over spatial bands (halo rows) instead of materializing im2col in HBM.
    x_nhwc = jnp.transpose(x, (0, 2, 3, 1)).astype(compute_dtype)
    x_sp = jnp.pad(x_nhwc, ((0, 0), (pad, pad), (pad, pad), (0, 0)))
    taps = [x_sp[:, dy:dy + hout, dx:dx + wout, :]
            for dy in range(k) for dx in range(k)]           # (dy, dx, cin)-major
    patches = jnp.concatenate(taps, axis=-1).reshape(m, kkc)
    patches = jnp.pad(patches, ((0, m_pad - m), (0, kkc_pad - kkc)))

    # (Cout, Cin, K, K) -> (K, K, Cin, Cout) -> (kkc_pad, cout_p); zero padding
    # keeps padded contraction rows and padded output channels exactly zero.
    w_mat = jnp.transpose(weight, (2, 3, 1, 0)).reshape(kkc, cout)
    w_mat = jnp.pad(w_mat, ((0, kkc_pad - kkc), (0, cout_p - cout)))
    w_mat = w_mat.astype(compute_dtype)

    in_bytes = jnp.dtype(compute_dtype).itemsize
    out_bytes = jnp.dtype(x.dtype).itemsize

    # VMEM budgets (double-buffered blocks + matmul temps + headroom).
    p_blk = tm * kkc_pad * in_bytes
    w_blk = kkc_pad * cout_p * in_bytes
    stats_blk = 2 * cout_p * 4
    out_blk = tm * cout_p * out_bytes
    conv_tmp = 2 * tm * cout_p * 4
    vmem1 = int(2 * (p_blk + w_blk + stats_blk) + conv_tmp + (8 << 20))
    vmem2 = int(2 * (p_blk + w_blk + stats_blk + out_blk) + conv_tmp + (8 << 20))

    flops_mm = 2 * m_pad * kkc_pad * cout_p
    cost1 = pl.CostEstimate(
        flops=flops_mm + 3 * m_pad * cout_p, transcendentals=0,
        bytes_accessed=m_pad * kkc_pad * in_bytes + kkc_pad * cout_p * in_bytes
        + n_tiles * 2 * cout_p * 4)
    cost2 = pl.CostEstimate(
        flops=flops_mm + 2 * m_pad * cout_p, transcendentals=0,
        bytes_accessed=m_pad * kkc_pad * in_bytes + kkc_pad * cout_p * in_bytes
        + 2 * cout_p * 4 + m_pad * cout_p * out_bytes)

    # ---- Pass 1: per-tile conv stats (sum, sumsq). Padded rows/cols are zero,
    # so they contribute nothing; the divisor below uses the true element count.
    stats = pl.pallas_call(
        _conv_stats_kernel,
        out_shape=jax.ShapeDtypeStruct((n_tiles, 2, cout_p), jnp.float32),
        grid=(n_tiles,),
        in_specs=[
            pl.BlockSpec((tm, kkc_pad), lambda i: (i, 0)),
            pl.BlockSpec((kkc_pad, cout_p), lambda i: (0, 0)),
        ],
        out_specs=pl.BlockSpec((1, 2, cout_p), lambda i: (i, 0, 0)),
        compiler_params=pltpu.CompilerParams(
            dimension_semantics=("parallel",), vmem_limit_bytes=vmem1),
        cost_estimate=cost1,
    )(patches, w_mat)

    # Tiny O(n_tiles * Cout) cross-tile reduction + folded per-channel
    # scale/shift (f32).  Variance uses E[x^2]-E[x]^2 with f32 accumulation.
    # TODO(synk): switch to per-tile centered (Chan) merging if catastrophic
    # cancellation is observed for very large activations / element counts.
    tot = jnp.sum(stats, axis=0)                        # (2, Cout_pad)
    mean = tot[0] / m
    var = jnp.maximum(tot[1] / m - mean * mean, 0.0)    # biased batch variance
    inv_std = lax.rsqrt(var + BN_EPS)
    gamma_p = jnp.pad(gamma.astype(jnp.float32), (0, cout_p - cout),
                      constant_values=1.0)              # 1.0 pad -> no NaN path
    beta_p = jnp.pad(beta.astype(jnp.float32), (0, cout_p - cout))
    scale = gamma_p * inv_std
    shift = beta_p - mean * scale
    ss = jnp.stack([scale, shift])                      # (2, Cout_pad), packed

    # ---- Pass 2: recompute conv tile + fused affine + ReLU (lane-dense stores).
    out_flat = pl.pallas_call(
        functools.partial(_conv_affine_relu_kernel, apply_relu=apply_relu),
        out_shape=jax.ShapeDtypeStruct((m_pad, cout_p), x.dtype),
        grid=(n_tiles,),
        in_specs=[
            pl.BlockSpec((tm, kkc_pad), lambda i: (i, 0)),
            pl.BlockSpec((kkc_pad, cout_p), lambda i: (0, 0)),
            pl.BlockSpec((2, cout_p), lambda i: (0, 0)),
        ],
        out_specs=pl.BlockSpec((tm, cout_p), lambda i: (i, 0)),
        compiler_params=pltpu.CompilerParams(
            dimension_semantics=("parallel",), vmem_limit_bytes=vmem2),
        cost_estimate=cost2,
    )(patches, w_mat, ss)

    # TODO(synk): an NHWC consumer could take out_flat[:m] directly and skip
    # this channel-slice + NCHW relayout (saves one full HBM round trip).
    out = out_flat[:m].reshape(n, hout, wout, cout_p)[..., :cout]
    return jnp.transpose(out, (0, 3, 1, 2))


def _reference(x, weight, bias, gamma, beta, apply_relu):
    conv = lax.conv_general_dilated(
        x.astype(jnp.float32), weight.astype(jnp.float32),
        window_strides=(1, 1), padding="SAME",
        dimension_numbers=("NCHW", "OIHW", "NCHW"))
    conv = conv + bias.reshape(1, -1, 1, 1)
    mean = conv.mean(axis=(0, 2, 3), keepdims=True)
    var = ((conv - mean) ** 2).mean(axis=(0, 2, 3), keepdims=True)
    out = (conv - mean) / jnp.sqrt(var + BN_EPS)
    out = out * gamma.reshape(1, -1, 1, 1) + beta.reshape(1, -1, 1, 1)
    if apply_relu:
        out = jnp.maximum(out, 0.0)
    return out


if __name__ == "__main__":
    # Small shapes consistent with the module: Conv(4, 8, 3, apply_relu=True)
    N, CIN, COUT, K, H, W = 2, 4, 8, 3, 16, 16
    APPLY_RELU = True

    key = jax.random.PRNGKey(0)
    kx, kw, kb, kg, kbe = jax.random.split(key, 5)

    x = jax.random.normal(kx, (N, CIN, H, W), dtype=jnp.float32)
    weight = jax.random.normal(kw, (COUT, CIN, K, K), dtype=jnp.float32) * 0.1
    bias = jax.random.normal(kb, (COUT,), dtype=jnp.float32) * 0.1
    gamma = 1.0 + 0.1 * jax.random.normal(kg, (COUT,), dtype=jnp.float32)
    beta = 0.1 * jax.random.normal(kbe, (COUT,), dtype=jnp.float32)

    ref = _reference(x, weight, bias, gamma, beta, APPLY_RELU)

    # Strict correctness check with f32 MXU inputs.
    out_f32 = jax.block_until_ready(
        conv_bn_relu(x, weight, bias, gamma, beta, apply_relu=APPLY_RELU,
                     compute_dtype=jnp.float32))
    assert out_f32.shape == (N, COUT, H, W)
    assert jnp.allclose(out_f32, ref, atol=1e-4, rtol=1e-4)

    # Default performance path: bf16 MXU inputs, f32 accumulation + f32 BN.
    out_bf16 = jax.block_until_ready(
        conv_bn_relu(x, weight, bias, gamma, beta, apply_relu=APPLY_RELU))
    assert out_bf16.shape == (N, COUT, H, W)
    assert jnp.allclose(out_bf16, ref, atol=5e-2, rtol=5e-2)

    print("KERNEL_OK")
</pallas_src>

<mosaic_0001>
module attributes {stable_mosaic.version = 11 : i64} {
  func.func @_conv_stats_kernel(%arg0: i32, %arg1: memref<512x128xf32, #tpu.memory_space<vmem>>, %arg2: memref<128x128xf32, #tpu.memory_space<vmem>>, %arg3: memref<1x2x128xf32, #tpu.memory_space<vmem>>) attributes {dimension_semantics = [#tpu.dimension_semantics<parallel>], iteration_bounds = array<i64: 1>, scalar_prefetch = 0 : i64, scratch_operands = 0 : i64, tpu.core_type = #tpu.core_type<tc>, window_params = [{transform_indices = @transform_0, window_bounds = array<i64: 512, 128>}, {pipeline_mode = #tpu.pipeline_mode<synchronous>, transform_indices = @transform_1, window_bounds = array<i64: 128, 128>}, {transform_indices = @transform_2, window_bounds = array<i64: 1, 2, 128>}]} {
    %c0 = arith.constant 0 : index
    %c0_0 = arith.constant 0 : index
    %0 = vector.load %arg1[%c0, %c0_0] : memref<512x128xf32, #tpu.memory_space<vmem>>, vector<512x128xf32>
    %c0_1 = arith.constant 0 : index
    %c0_2 = arith.constant 0 : index
    %1 = vector.load %arg2[%c0_1, %c0_2] : memref<128x128xf32, #tpu.memory_space<vmem>>, vector<128x128xf32>
    %cst = arith.constant dense<0.000000e+00> : vector<512x128xf32>
    %2 = tpu.matmul %0, %1, %cst {dimension_numbers = #tpu.dot_dimension_numbers<[1], [0], [0], [1], [0, 0, 1, 1], [], []>} : vector<512x128xf32>, vector<128x128xf32>, vector<512x128xf32> -> vector<512x128xf32>
    %cst_3 = arith.constant dense<0.000000e+00> : vector<128xf32>
    %3 = vector.multi_reduction <add>, %2, %cst_3 [0] : vector<512x128xf32> to vector<128xf32>
    %4 = vector.shape_cast %3 : vector<128xf32> to vector<1x128xf32>
    %c0_4 = arith.constant 0 : index
    %c0_5 = arith.constant 0 : index
    %c0_6 = arith.constant 0 : index
    %5 = vector.load %arg3[%c0_4, %c0_5, %c0_6] : memref<1x2x128xf32, #tpu.memory_space<vmem>>, vector<1x1x128xf32>
    %6 = vector.shape_cast %5 : vector<1x1x128xf32> to vector<1x128xf32>
    %7 = vector.shape_cast %4 : vector<1x128xf32> to vector<1x1x128xf32>
    tpu.vector_store %arg3[%c0_4, %c0_5, %c0_6], %7 {strides = array<i32>} : memref<1x2x128xf32, #tpu.memory_space<vmem>>, vector<1x1x128xf32>,
    %8 = arith.mulf %2, %2 : vector<512x128xf32>
    %cst_7 = arith.constant dense<0.000000e+00> : vector<128xf32>
    %9 = vector.multi_reduction <add>, %8, %cst_7 [0] : vector<512x128xf32> to vector<128xf32>
    %10 = vector.shape_cast %9 : vector<128xf32> to vector<1x128xf32>
    %c0_8 = arith.constant 0 : index
    %c1 = arith.constant 1 : index
    %c0_9 = arith.constant 0 : index
    %11 = vector.load %arg3[%c0_8, %c1, %c0_9] : memref<1x2x128xf32, #tpu.memory_space<vmem>>, vector<1x1x128xf32>
    %12 = vector.shape_cast %11 : vector<1x1x128xf32> to vector<1x128xf32>
    %13 = vector.shape_cast %10 : vector<1x128xf32> to vector<1x1x128xf32>
    tpu.vector_store %arg3[%c0_8, %c1, %c0_9], %13 {strides = array<i32>} : memref<1x2x128xf32, #tpu.memory_space<vmem>>, vector<1x1x128xf32>,
    return
  }
  func.func @transform_0(%arg0: i32) -> (i32, i32) {
    %c0_i32 = arith.constant 0 : i32
    %c0_i32_0 = arith.constant 0 : i32
    return %arg0, %c0_i32 : i32, i32
  }
  func.func @transform_1(%arg0: i32) -> (i32, i32) {
    %c0_i32 = arith.constant 0 : i32
    %c0_i32_0 = arith.constant 0 : i32
    %c0_i32_1 = arith.constant 0 : i32
    return %c0_i32, %c0_i32_0 : i32, i32
  }
  func.func @transform_2(%arg0: i32) -> (i32, i32, i32) {
    %c0_i32 = arith.constant 0 : i32
    %c0_i32_0 = arith.constant 0 : i32
    %c0_i32_1 = arith.constant 0 : i32
    return %arg0, %c0_i32, %c0_i32_0 : i32, i32, i32
  }
}

</mosaic_0001>

<bundles_post_ra>
// kernel: tpu_custom_call.1
= control target key start
LH: loop header
LB: loop body
LE: loop exit
PB: predicated region body
PF: predicated region fallthrough
CT: control target
= control target key end

     0   :  { %7 = vsyncpa [#allocation3], 0  ;;  %s890_s0 = inlined_call_operand.hbm [shape: f32[512,128], index: 0, kind: input, shape index: {}]   ;;  %s891_s1 = inlined_call_operand.hbm [shape: f32[128,128], index: 1, kind: input, shape index: {}]   ;;  %s892_s2 = inlined_call_operand.hbm [shape: f32[1,2,128], index: 2, kind: output, shape index: {}]  }
   0x1   :  { %8 = vsyncpa [#allocation6], 0 }
   0x2   :  { %9 = vsyncpa [#allocation4], 0  ;;  %s14_s11 = sshll.u32 %s890_s0, 4  ;;  %s686_s12 = smov [#allocation2]   ;;  %s15_s11 = int_to_ptr.hbm [resolvable:$true] %s14_s11 }
   0x3   :  { %s16_s13 = sshll.u32 %s686_s12, 4  ;;  %s27_s16 = sshll.u32 %s891_s1, 4  ;;  %s17_s13 = int_to_ptr.vmem [resolvable:$true] %s16_s13  ;;  %s28_s16 = int_to_ptr.hbm [resolvable:$true] %s27_s16 }
   0x4   :  { %s687_s17 = smov 128   ;;  %s688_s18 = smov 8  }
   0x5   :  { %22 = dma.hbm_to_vmem [thread:$0]  %s15_s11, 8192, %s17_s13, [#allocation3], %s687_s17, %s687_s17, %s688_s18  }
   0x6   :  { %s689_s19 = smov [#allocation5]  }
   0x7   :  { %s29_s20 = sshll.u32 %s689_s19, 4  ;;  %s30_s20 = int_to_ptr.vmem [resolvable:$true] %s29_s20 }
   0x8   :  { %35 = dma.hbm_to_vmem [thread:$0]  %s28_s16, 2048, %s30_s20, [#allocation6], %s687_s17, %s687_s17, %s688_s18  }
   0x9   :  { %680 = dma.done.wait [#allocation3], 8192  }
   0xa   :  { %681 = vsyncadd [#allocation3], 4294959104 }
   0xb   :  { %682 = dma.done.wait [#allocation6], 2048  }
   0xc   :  { %683 = vsyncadd [#allocation6], 4294965248  ;;  %v123_v0 = vld [vmem:[#allocation5 + $0x78] sm:$0xff]  ;;  %v122_v1 = vld [vmem:[#allocation5 + $0x70] sm:$0xff]  ;;  %s690_s0 = smov [#allocation7]   ;;  %s544_s23 = sshll.u32 %s892_s2, 4  ;;  %s545_s23 = int_to_ptr.hbm [resolvable:$true] %s544_s23 }
   0xd   :  { %124 = vmatpush.msra.mxu0 %v123_v0  ;;  %555 = vmatpush.msra.mxu1 %v123_v0  ;;  %v121_v2 = vld [vmem:[#allocation5 + $0x68] sm:$0xff]  ;;  %v120_v3 = vld [vmem:[#allocation5 + $0x60] sm:$0xff]  ;;  %v119_v4 = vld [vmem:[#allocation5 + $0x58] sm:$0xff]  ;;  %s542_s1 = sshll.u32 %s690_s0, 4  ;;  %s543_s1 = int_to_ptr.vmem [resolvable:$true] %s542_s1 }
   0xe   :  { %556 = vmatpush.msra.mxu2 %v123_v0  ;;  %557 = vmatpush.msra.mxu3 %v123_v0  ;;  %v118_v5 = vld [vmem:[#allocation5 + $0x50] sm:$0xff]  ;;  %v117_v6 = vld [vmem:[#allocation5 + $0x48] sm:$0xff]  ;;  %v116_v7 = vld [vmem:[#allocation5 + $0x40] sm:$0xff] }
   0xf   :  { %125 = vmatpush.msra.mxu0 %v122_v1  ;;  %558 = vmatpush.msra.mxu1 %v122_v1  ;;  %v115_v8 = vld [vmem:[#allocation5 + $0x38] sm:$0xff]  ;;  %v114_v9 = vld [vmem:[#allocation5 + $0x30] sm:$0xff]  ;;  %v113_v10 = vld [vmem:[#allocation5 + $0x28] sm:$0xff] }
  0x10   :  { %559 = vmatpush.msra.mxu2 %v122_v1  ;;  %560 = vmatpush.msra.mxu3 %v122_v1  ;;  %v112_v11 = vld [vmem:[#allocation5 + $0x20] sm:$0xff]  ;;  %v111_v12 = vld [vmem:[#allocation5 + $0x18] sm:$0xff]  ;;  %v110_v13 = vld [vmem:[#allocation5 + $0x10] sm:$0xff] }
  0x11   :  { %126 = vmatpush.msra.mxu0 %v121_v2  ;;  %561 = vmatpush.msra.mxu1 %v121_v2  ;;  %v109_v14 = vld [vmem:[#allocation5 + $0x8] sm:$0xff]  ;;  %v108_v15 = vld [vmem:[#allocation5] sm:$0xff]  ;;  %v46_v20 = vld [vmem:[#allocation2 + $0x10] sm:$0xff] }
  0x12   :  { %562 = vmatpush.msra.mxu2 %v121_v2  ;;  %563 = vmatpush.msra.mxu3 %v121_v2  ;;  %v44_v16 = vld [vmem:[#allocation2] sm:$0xff]  ;;  %v45_v18 = vld [vmem:[#allocation2 + $0x8] sm:$0xff]  ;;  %v62_v21 = vld [vmem:[#allocation2 + $0x90] sm:$0xff] }
  0x13   :  { %127 = vmatpush.msra.mxu0 %v120_v3  ;;  %564 = vmatpush.msra.mxu1 %v120_v3  ;;  %v60_v17 = vld [vmem:[#allocation2 + $0x80] sm:$0xff]  ;;  %v61_v19 = vld [vmem:[#allocation2 + $0x88] sm:$0xff]  ;;  %v47_v22 = vld [vmem:[#allocation2 + $0x18] sm:$0xff] }
  0x14   :  { %565 = vmatpush.msra.mxu2 %v120_v3  ;;  %566 = vmatpush.msra.mxu3 %v120_v3  ;;  %v63_v23 = vld [vmem:[#allocation2 + $0x98] sm:$0xff]  ;;  %v76_v24 = vld [vmem:[#allocation2 + $0x100] sm:$0xff]  ;;  %v77_v27 = vld [vmem:[#allocation2 + $0x108] sm:$0xff] }
  0x15   :  { %128 = vmatpush.msra.mxu0 %v119_v4  ;;  %567 = vmatpush.msra.mxu1 %v119_v4  ;;  %v48_v25 = vld [vmem:[#allocation2 + $0x20] sm:$0xff]  ;;  %v49_v28 = vld [vmem:[#allocation2 + $0x28] sm:$0xff]  ;;  %v78_v30 = vld [vmem:[#allocation2 + $0x110] sm:$0xff] }
  0x16   :  { %568 = vmatpush.msra.mxu2 %v119_v4  ;;  %569 = vmatpush.msra.mxu3 %v119_v4  ;;  %v64_v26 = vld [vmem:[#allocation2 + $0xa0] sm:$0xff]  ;;  %v65_v29 = vld [vmem:[#allocation2 + $0xa8] sm:$0xff]  ;;  %v50_v31 = vld [vmem:[#allocation2 + $0x30] sm:$0xff] }
  0x17   :  { %129 = vmatpush.msra.mxu0 %v118_v5  ;;  %570 = vmatpush.msra.mxu1 %v118_v5  ;;  %v66_v32 = vld [vmem:[#allocation2 + $0xb0] sm:$0xff]  ;;  %v79_v33 = vld [vmem:[#allocation2 + $0x118] sm:$0xff]  ;;  %v80_v36 = vld [vmem:[#allocation2 + $0x120] sm:$0xff] }
  0x18   :  { %571 = vmatpush.msra.mxu2 %v118_v5  ;;  %572 = vmatpush.msra.mxu3 %v118_v5  ;;  %v51_v34 = vld [vmem:[#allocation2 + $0x38] sm:$0xff]  ;;  %v92_v37 = vld [vmem:[#allocation2 + $0x180] sm:$0xff]  ;;  %v81_v40 = vld [vmem:[#allocation2 + $0x128] sm:$0xff] }
  0x19   :  { %130 = vmatpush.msra.mxu0 %v117_v6  ;;  %573 = vmatpush.msra.mxu1 %v117_v6  ;;  %v67_v35 = vld [vmem:[#allocation2 + $0xb8] sm:$0xff]  ;;  %v52_v38 = vld [vmem:[#allocation2 + $0x40] sm:$0xff]  ;;  %v93_v41 = vld [vmem:[#allocation2 + $0x188] sm:$0xff] }
  0x1a   :  { %574 = vmatpush.msra.mxu2 %v117_v6  ;;  %575 = vmatpush.msra.mxu3 %v117_v6  ;;  %v68_v39 = vld [vmem:[#allocation2 + $0xc0] sm:$0xff]  ;;  %v53_v42 = vld [vmem:[#allocation2 + $0x48] sm:$0xff]  ;;  %v82_v44 = vld [vmem:[#allocation2 + $0x130] sm:$0xff] }
  0x1b   :  { %131 = vmatpush.msra.mxu0 %v116_v7  ;;  %576 = vmatpush.msra.mxu1 %v116_v7  ;;  %v69_v43 = vld [vmem:[#allocation2 + $0xc8] sm:$0xff]  ;;  %v94_v45 = vld [vmem:[#allocation2 + $0x190] sm:$0xff]  ;;  %v83_v48 = vld [vmem:[#allocation2 + $0x138] sm:$0xff] }
  0x1c   :  { %577 = vmatpush.msra.mxu2 %v116_v7  ;;  %578 = vmatpush.msra.mxu3 %v116_v7  ;;  %v54_v46 = vld [vmem:[#allocation2 + $0x50] sm:$0xff]  ;;  %v95_v49 = vld [vmem:[#allocation2 + $0x198] sm:$0xff]  ;;  %v84_v52 = vld [vmem:[#allocation2 + $0x140] sm:$0xff] }
  0x1d   :  { %132 = vmatpush.msra.mxu0 %v115_v8  ;;  %579 = vmatpush.msra.mxu1 %v115_v8  ;;  %v70_v47 = vld [vmem:[#allocation2 + $0xd0] sm:$0xff]  ;;  %v55_v50 = vld [vmem:[#allocation2 + $0x58] sm:$0xff]  ;;  %v96_v53 = vld [vmem:[#allocation2 + $0x1a0] sm:$0xff] }
  0x1e   :  { %580 = vmatpush.msra.mxu2 %v115_v8  ;;  %581 = vmatpush.msra.mxu3 %v115_v8  ;;  %v71_v51 = vld [vmem:[#allocation2 + $0xd8] sm:$0xff]  ;;  %v56_v54 = vld [vmem:[#allocation2 + $0x60] sm:$0xff]  ;;  %v85_v56 = vld [vmem:[#allocation2 + $0x148] sm:$0xff] }
  0x1f   :  { %133 = vmatpush.msra.mxu0 %v114_v9  ;;  %582 = vmatpush.msra.mxu1 %v114_v9  ;;  %v72_v55 = vld [vmem:[#allocation2 + $0xe0] sm:$0xff]  ;;  %v97_v57 = vld [vmem:[#allocation2 + $0x1a8] sm:$0xff]  ;;  %v86_v60 = vld [vmem:[#allocation2 + $0x150] sm:$0xff] }
  0x20   :  { %583 = vmatpush.msra.mxu2 %v114_v9  ;;  %584 = vmatpush.msra.mxu3 %v114_v9  ;;  %v57_v58 = vld [vmem:[#allocation2 + $0x68] sm:$0xff]  ;;  %v98_v61 = vld [vmem:[#allocation2 + $0x1b0] sm:$0xff]  ;;  %v87_v0 = vld [vmem:[#allocation2 + $0x158] sm:$0xff] }
  0x21   :  { %134 = vmatpush.msra.mxu0 %v113_v10  ;;  %585 = vmatpush.msra.mxu1 %v113_v10  ;;  %v73_v59 = vld [vmem:[#allocation2 + $0xe8] sm:$0xff]  ;;  %v58_v62 = vld [vmem:[#allocation2 + $0x70] sm:$0xff]  ;;  %v99_v1 = vld [vmem:[#allocation2 + $0x1b8] sm:$0xff] }
  0x22   :  { %586 = vmatpush.msra.mxu2 %v113_v10  ;;  %587 = vmatpush.msra.mxu3 %v113_v10  ;;  %v74_v63 = vld [vmem:[#allocation2 + $0xf0] sm:$0xff]  ;;  %v59_v2 = vld [vmem:[#allocation2 + $0x78] sm:$0xff]  ;;  %v88_v4 = vld [vmem:[#allocation2 + $0x160] sm:$0xff] }
  0x23   :  { %135 = vmatpush.msra.mxu0 %v112_v11  ;;  %588 = vmatpush.msra.mxu1 %v112_v11  ;;  %v75_v3 = vld [vmem:[#allocation2 + $0xf8] sm:$0xff]  ;;  %v100_v5 = vld [vmem:[#allocation2 + $0x1c0] sm:$0xff]  ;;  %v89_v8 = vld [vmem:[#allocation2 + $0x168] sm:$0xff] }
  0x24   :  { %589 = vmatpush.msra.mxu2 %v112_v11  ;;  %590 = vmatpush.msra.mxu3 %v112_v11  ;;  %v101_v9 = vld [vmem:[#allocation2 + $0x1c8] sm:$0xff] }
  0x25   :  { %136 = vmatpush.msra.mxu0 %v111_v12  ;;  %591 = vmatpush.msra.mxu1 %v111_v12 }
  0x26   :  { %592 = vmatpush.msra.mxu2 %v111_v12  ;;  %593 = vmatpush.msra.mxu3 %v111_v12 }
  0x27   :  { %137 = vmatpush.msra.mxu0 %v110_v13  ;;  %594 = vmatpush.msra.mxu1 %v110_v13 }
  0x28   :  { %595 = vmatpush.msra.mxu2 %v110_v13  ;;  %596 = vmatpush.msra.mxu3 %v110_v13 }
  0x29   :  { %138 = vmatpush.msra.mxu0 %v109_v14  ;;  %597 = vmatpush.msra.mxu1 %v109_v14 }
  0x2a   :  { %598 = vmatpush.msra.mxu2 %v109_v14  ;;  %599 = vmatpush.msra.mxu3 %v109_v14 }
  0x2b   :  { %139 = vmatpush.msra.mxu0 %v108_v15  ;;  %600 = vmatpush.msra.mxu1 %v108_v15 }
  0x2c   :  { %140 = vmatmul.f32.vlgmr.msra.gmra.mxu0 %v44_v16  ;;  %188 = vmatmul.f32.vlgmr.msra.gmra.mxu1 %v60_v17  ;;  %v90_v16 = vld [vmem:[#allocation2 + $0x170] sm:$0xff] }
  0x2d   :  { %601 = vmatpush.msra.mxu2 %v108_v15  ;;  %602 = vmatpush.msra.mxu3 %v108_v15  ;;  %v102_v17 = vld [vmem:[#allocation2 + $0x1d0] sm:$0xff] }
  0x2e   :  { %236 = vmatmul.f32.vlgmr.msra.gmra.mxu2 %v76_v24  ;;  %284 = vmatmul.f32.vlgmr.msra.gmra.mxu3 %v92_v37  ;;  %v103_v24 = vld [vmem:[#allocation2 + $0x1d8] sm:$0xff] }
  0x34   :  { %143 = vmatmul.f32.gmra.mxu0 %v45_v18  ;;  %191 = vmatmul.f32.gmra.mxu1 %v61_v19 }
  0x36   :  { %239 = vmatmul.f32.gmra.mxu2 %v77_v27  ;;  %287 = vmatmul.f32.gmra.mxu3 %v93_v41 }
  0x3c   :  { %146 = vmatmul.f32.gmra.mxu0 %v46_v20  ;;  %194 = vmatmul.f32.gmra.mxu1 %v62_v21 }
  0x3e   :  { %242 = vmatmul.f32.gmra.mxu2 %v78_v30  ;;  %290 = vmatmul.f32.gmra.mxu3 %v94_v45 }
  0x44   :  { %149 = vmatmul.f32.gmra.mxu0 %v47_v22  ;;  %197 = vmatmul.f32.gmra.mxu1 %v63_v23  ;;  %v91_v23 = vld [vmem:[#allocation2 + $0x178] sm:$0xff] }
  0x46   :  { %245 = vmatmul.f32.gmra.mxu2 %v79_v33  ;;  %293 = vmatmul.f32.gmra.mxu3 %v95_v49 }
  0x4c   :  { %152 = vmatmul.f32.gmra.mxu0 %v48_v25  ;;  %200 = vmatmul.f32.gmra.mxu1 %v64_v26 }
  0x4e   :  { %248 = vmatmul.f32.gmra.mxu2 %v80_v36  ;;  %296 = vmatmul.f32.gmra.mxu3 %v96_v53  ;;  %v105_v36 = vld [vmem:[#allocation2 + $0x1e8] sm:$0xff] }
  0x54   :  { %155 = vmatmul.f32.gmra.mxu0 %v49_v28  ;;  %203 = vmatmul.f32.gmra.mxu1 %v65_v29  ;;  %v104_v29 = vld [vmem:[#allocation2 + $0x1e0] sm:$0xff] }
  0x56   :  { %251 = vmatmul.f32.gmra.mxu2 %v81_v40  ;;  %299 = vmatmul.f32.gmra.mxu3 %v97_v57  ;;  %v106_v40 = vld [vmem:[#allocation2 + $0x1f0] sm:$0xff] }
  0x5c   :  { %158 = vmatmul.f32.gmra.mxu0 %v50_v31  ;;  %206 = vmatmul.f32.gmra.mxu1 %v66_v32 }
  0x5e   :  { %254 = vmatmul.f32.gmra.mxu2 %v82_v44  ;;  %302 = vmatmul.f32.gmra.mxu3 %v98_v61  ;;  %v107_v44 = vld [vmem:[#allocation2 + $0x1f8] sm:$0xff] }
  0x64   :  { %161 = vmatmul.f32.gmra.mxu0 %v51_v34  ;;  %209 = vmatmul.f32.gmra.mxu1 %v67_v35 }
  0x66   :  { %257 = vmatmul.f32.gmra.mxu2 %v83_v48  ;;  %305 = vmatmul.f32.gmra.mxu3 %v99_v1 }
  0x6c   :  { %164 = vmatmul.f32.gmra.mxu0 %v52_v38  ;;  %212 = vmatmul.f32.gmra.mxu1 %v68_v39 }
  0x6e   :  { %260 = vmatmul.f32.gmra.mxu2 %v84_v52  ;;  %308 = vmatmul.f32.gmra.mxu3 %v100_v5 }
  0x74   :  { %167 = vmatmul.f32.gmra.mxu0 %v53_v42  ;;  %215 = vmatmul.f32.gmra.mxu1 %v69_v43 }
  0x76   :  { %263 = vmatmul.f32.gmra.mxu2 %v85_v56  ;;  %311 = vmatmul.f32.gmra.mxu3 %v101_v9 }
  0x7c   :  { %170 = vmatmul.f32.gmra.mxu0 %v54_v46  ;;  %218 = vmatmul.f32.gmra.mxu1 %v70_v47 }
  0x7e   :  { %266 = vmatmul.f32.gmra.mxu2 %v86_v60  ;;  %314 = vmatmul.f32.gmra.mxu3 %v102_v17 }
  0x84   :  { %173 = vmatmul.f32.gmra.mxu0 %v55_v50  ;;  %221 = vmatmul.f32.gmra.mxu1 %v71_v51 }
  0x86   :  { %269 = vmatmul.f32.gmra.mxu2 %v87_v0  ;;  %317 = vmatmul.f32.gmra.mxu3 %v103_v24 }
  0x8c   :  { %176 = vmatmul.f32.gmra.mxu0 %v56_v54  ;;  %224 = vmatmul.f32.gmra.mxu1 %v72_v55 }
  0x8e   :  { %272 = vmatmul.f32.gmra.mxu2 %v88_v4  ;;  %320 = vmatmul.f32.gmra.mxu3 %v104_v29 }
  0x94   :  { %179 = vmatmul.f32.gmra.mxu0 %v57_v58  ;;  %227 = vmatmul.f32.gmra.mxu1 %v73_v59 }
  0x96   :  { %275 = vmatmul.f32.gmra.mxu2 %v89_v8  ;;  %323 = vmatmul.f32.gmra.mxu3 %v105_v36 }
  0x9c   :  { %182 = vmatmul.f32.gmra.mxu0 %v58_v62  ;;  %230 = vmatmul.f32.gmra.mxu1 %v74_v63 }
  0x9e   :  { %278 = vmatmul.f32.gmra.mxu2 %v90_v16  ;;  %326 = vmatmul.f32.gmra.mxu3 %v106_v40 }
  0xa4   :  { %185 = vmatmul.f32.gmra.mxu0 %v59_v2  ;;  %233 = vmatmul.f32.gmra.mxu1 %v75_v3 }
  0xa6   :  { %281 = vmatmul.f32.gmra.mxu2 %v91_v23  ;;  %329 = vmatmul.f32.gmra.mxu3 %v107_v44 }
  0xa9   :  { %v141_v6 = vpop.f32.mrf.mxu0  ;;  %v712_v7 = vpop.f32.mrf.mxu1 }
  0xaa   :  { %v403_v12 = vmul.f32 %v141_v6, %v141_v6 }
  0xb1   :  { %v144_v10 = vpop.f32.mrf.mxu0  ;;  %v714_v11 = vpop.f32.mrf.mxu1 }
  0xb2   :  { %v333_v13 = vadd.f32 %v144_v10, %v141_v6  ;;  %v404_v14 = vmul.f32 %v144_v10, %v144_v10  ;;  %v720_v34 = vpop.f32.mrf.mxu2  ;;  %v734_v49 = vpop.f32.mrf.mxu3 }
  0xb4   :  { %v467_v15 = vadd.f32 %v404_v14, %v403_v12 }
  0xb9   :  { %v147_v18 = vpop.f32.mrf.mxu0  ;;  %v716_v21 = vpop.f32.mrf.mxu1 }
  0xba   :  { %v334_v19 = vadd.f32 %v333_v13, %v147_v18  ;;  %v405_v20 = vmul.f32 %v147_v18, %v147_v18  ;;  %v724_v39 = vpop.f32.mrf.mxu2  ;;  %v740_v53 = vpop.f32.mrf.mxu3 }
  0xbc   :  { %v468_v22 = vadd.f32 %v467_v15, %v405_v20 }
  0xc1   :  { %v150_v25 = vpop.f32.mrf.mxu0  ;;  %v718_v30 = vpop.f32.mrf.mxu1 }
  0xc2   :  { %v335_v26 = vadd.f32 %v334_v19, %v150_v25  ;;  %v406_v27 = vmul.f32 %v150_v25, %v150_v25  ;;  %v728_v43 = vpop.f32.mrf.mxu2  ;;  %v746_v57 = vpop.f32.mrf.mxu3 }
  0xc4   :  { %v469_v28 = vadd.f32 %v468_v22, %v406_v27 }
  0xc9   :  { %v153_v31 = vpop.f32.mrf.mxu0  ;;  %v722_v37 = vpop.f32.mrf.mxu1 }
  0xca   :  { %v336_v32 = vadd.f32 %v335_v26, %v153_v31  ;;  %v407_v33 = vmul.f32 %v153_v31, %v153_v31  ;;  %v732_v47 = vpop.f32.mrf.mxu2  ;;  %v752_v61 = vpop.f32.mrf.mxu3 }
  0xcc   :  { %v470_v35 = vadd.f32 %v469_v28, %v407_v33 }
  0xd1   :  { %v156_v38 = vpop.f32.mrf.mxu0  ;;  %v726_v42 = vpop.f32.mrf.mxu1 }
  0xd2   :  { %v738_v51 = vpop.f32.mrf.mxu2  ;;  %v408_v0 = vmul.f32 %v156_v38, %v156_v38  ;;  %v337_v2 = vadd.f32 %v336_v32, %v156_v38  ;;  %v758_v4 = vpop.f32.mrf.mxu3 }
  0xd4   :  { %v471_v5 = vadd.f32 %v470_v35, %v408_v0 }
  0xd9   :  { %v159_v41 = vpop.f32.mrf.mxu0  ;;  %v730_v46 = vpop.f32.mrf.mxu1 }
  0xda   :  { %v744_v56 = vpop.f32.mrf.mxu2  ;;  %v409_v3 = vmul.f32 %v159_v41, %v159_v41  ;;  %v338_v6 = vadd.f32 %v337_v2, %v159_v41  ;;  %v764_v27 = vpop.f32.mrf.mxu3 }
  0xdc   :  { %v472_v10 = vadd.f32 %v471_v5, %v409_v3 }
  0xe1   :  { %v162_v45 = vpop.f32.mrf.mxu0  ;;  %v736_v50 = vpop.f32.mrf.mxu1 }
  0xe2   :  { %v750_v60 = vpop.f32.mrf.mxu2  ;;  %v410_v8 = vmul.f32 %v162_v45, %v162_v45  ;;  %v339_v12 = vadd.f32 %v338_v6, %v162_v45  ;;  %v768_v3 = vpop.f32.mrf.mxu3  ;;  %v420_v6 = vmul.f32 %v714_v11, %v714_v11 }
  0xe4   :  { %v473_v14 = vadd.f32 %v472_v10, %v410_v8  ;;  %v421_v10 = vmul.f32 %v716_v21, %v716_v21 }
  0xe9   :  { %v165_v48 = vpop.f32.mrf.mxu0  ;;  %v742_v54 = vpop.f32.mrf.mxu1 }
  0xea   :  { %v756_v1 = vpop.f32.mrf.mxu2  ;;  %v411_v13 = vmul.f32 %v165_v48, %v165_v48  ;;  %v340_v15 = vadd.f32 %v339_v12, %v165_v48 }
  0xec   :  { %v474_v18 = vadd.f32 %v473_v14, %v411_v13 }
  0xf1   :  { %v168_v52 = vpop.f32.mrf.mxu0  ;;  %v748_v59 = vpop.f32.mrf.mxu1 }
  0xf2   :  { %v412_v16 = vmul.f32 %v168_v52, %v168_v52  ;;  %v341_v19 = vadd.f32 %v340_v15, %v168_v52  ;;  %v762_v22 = vpop.f32.mrf.mxu2  ;;  %v422_v15 = vmul.f32 %v718_v30, %v718_v30 }
  0xf4   :  { %v475_v23 = vadd.f32 %v474_v18, %v412_v16 }
  0xf9   :  { %v171_v55 = vpop.f32.mrf.mxu0  ;;  %v754_v63 = vpop.f32.mrf.mxu1 }
  0xfa   :  { %v413_v20 = vmul.f32 %v171_v55, %v171_v55  ;;  %v342_v24 = vadd.f32 %v341_v19, %v171_v55  ;;  %v766_v52 = vpop.f32.mrf.mxu2  ;;  %v423_v19 = vmul.f32 %v722_v37, %v722_v37 }
  0xfc   :  { %v476_v28 = vadd.f32 %v475_v23, %v413_v20  ;;  %v787_v23 = vpop.f32.mrf.mxu3 }
 0x101   :  { %v174_v58 = vpop.f32.mrf.mxu0  ;;  %v760_v17 = vpop.f32.mrf.mxu1 }
 0x102   :  { %v414_v25 = vmul.f32 %v174_v58, %v174_v58  ;;  %v343_v29 = vadd.f32 %v342_v24, %v174_v58  ;;  %v419_v58 = vmul.f32 %v712_v7, %v712_v7  ;;  %v782_v18 = vpop.f32.mrf.mxu2 }
 0x104   :  { %v477_v32 = vadd.f32 %v476_v28, %v414_v25 }
 0x109   :  { %v177_v62 = vpop.f32.mrf.mxu0  ;;  %v225_v41 = vpop.f32.mrf.mxu1 }
 0x10a   :  { %v415_v31 = vmul.f32 %v177_v62, %v177_v62  ;;  %v344_v33 = vadd.f32 %v343_v29, %v177_v62  ;;  %v426_v29 = vmul.f32 %v736_v50, %v736_v50 }
 0x10c   :  { %v478_v36 = vadd.f32 %v477_v32, %v415_v31 }
 0x111   :  { %v180_v9 = vpop.f32.mrf.mxu0  ;;  %v228_v14 = vpop.f32.mrf.mxu1 }
 0x112   :  { %v416_v35 = vmul.f32 %v180_v9, %v180_v9  ;;  %v345_v38 = vadd.f32 %v344_v33, %v180_v9  ;;  %v427_v33 = vmul.f32 %v742_v54, %v742_v54 }
 0x114   :  { %v479_v44 = vadd.f32 %v478_v36, %v416_v35  ;;  %v801_v36 = vpop.f32.mrf.mxu2 }
 0x119   :  { %v183_v26 = vpop.f32.mrf.mxu0  ;;  %v231_v32 = vpop.f32.mrf.mxu1 }
 0x11a   :  { %v417_v40 = vmul.f32 %v183_v26, %v183_v26  ;;  %v346_v45 = vadd.f32 %v345_v38, %v183_v26  ;;  %v428_v38 = vmul.f32 %v748_v59, %v748_v59 }
 0x11c   :  { %v480_v55 = vadd.f32 %v479_v44, %v417_v40  ;;  %v806_v44 = vpop.f32.mrf.mxu3 }
 0x121   :  { %v186_v48 = vpop.f32.mrf.mxu0 }
 0x122   :  { %v347_v0 = vadd.f32 %v346_v45, %v186_v48  ;;  %v418_v2 = vmul.f32 %v186_v48, %v186_v48 }
 0x124   :  { %v348_v62 = vadd.f32 %v347_v0, %v712_v7  ;;  %v481_v5 = vadd.f32 %v480_v55, %v418_v2 }
 0x126   :  { %v349_v8 = vadd.f32 %v348_v62, %v714_v11  ;;  %v482_v9 = vadd.f32 %v481_v5, %v419_v58  ;;  %v431_v62 = vmul.f32 %v225_v41, %v225_v41  ;;  %v234_v5 = vpop.f32.mrf.mxu1 }
 0x128   :  { %v350_v12 = vadd.f32 %v349_v8, %v716_v21  ;;  %v483_v13 = vadd.f32 %v482_v9, %v420_v6  ;;  %v424_v21 = vmul.f32 %v726_v42, %v726_v42  ;;  %v432_v8 = vmul.f32 %v228_v14, %v228_v14  ;;  %v273_v9 = vpop.f32.mrf.mxu2 }
 0x12a   :  { %v351_v16 = vadd.f32 %v350_v12, %v718_v30  ;;  %v484_v7 = vadd.f32 %v483_v13, %v421_v10  ;;  %v425_v30 = vmul.f32 %v730_v46, %v730_v46  ;;  %v433_v13 = vmul.f32 %v231_v32, %v231_v32 }
 0x12c   :  { %v352_v11 = vadd.f32 %v351_v16, %v722_v37  ;;  %v485_v20 = vadd.f32 %v484_v7, %v422_v15  ;;  %v434_v15 = vmul.f32 %v234_v5, %v234_v5 }
 0x12e   :  { %v353_v24 = vadd.f32 %v352_v11, %v726_v42  ;;  %v486_v25 = vadd.f32 %v485_v20, %v423_v19 }
 0x130   :  { %v487_v26 = vadd.f32 %v486_v25, %v424_v21  ;;  %v354_v28 = vadd.f32 %v353_v24, %v730_v46  ;;  %v437_v21 = vmul.f32 %v728_v43, %v728_v43 }
 0x132   :  { %v355_v37 = vadd.f32 %v354_v28, %v736_v50  ;;  %v488_v31 = vadd.f32 %v487_v26, %v425_v30  ;;  %v429_v50 = vmul.f32 %v754_v63, %v754_v63  ;;  %v276_v30 = vpop.f32.mrf.mxu2  ;;  %v438_v26 = vmul.f32 %v732_v47, %v732_v47 }
 0x134   :  { %v356_v35 = vadd.f32 %v355_v37, %v742_v54  ;;  %v489_v42 = vadd.f32 %v488_v31, %v426_v29  ;;  %v430_v54 = vmul.f32 %v760_v17, %v760_v17  ;;  %v439_v37 = vmul.f32 %v738_v51, %v738_v51 }
 0x136   :  { %v357_v46 = vadd.f32 %v356_v35, %v748_v59  ;;  %v490_v40 = vadd.f32 %v489_v42, %v427_v33  ;;  %v441_v35 = vmul.f32 %v750_v60, %v750_v60 }
 0x138   :  { %v358_v45 = vadd.f32 %v357_v46, %v754_v63  ;;  %v491_v48 = vadd.f32 %v490_v40, %v428_v38  ;;  %v814_v63 = vpop.f32.mrf.mxu3  ;;  %v442_v38 = vmul.f32 %v756_v1, %v756_v1 }
 0x13a   :  { %v359_v55 = vadd.f32 %v358_v45, %v760_v17  ;;  %v492_v0 = vadd.f32 %v491_v48, %v429_v50  ;;  %v435_v17 = vmul.f32 %v720_v34, %v720_v34  ;;  %v443_v50 = vmul.f32 %v762_v22, %v762_v22 }
 0x13c   :  { %v493_v2 = vadd.f32 %v492_v0, %v430_v54  ;;  %v360_v58 = vadd.f32 %v359_v55, %v225_v41  ;;  %v436_v41 = vmul.f32 %v724_v39, %v724_v39  ;;  %v444_v55 = vmul.f32 %v766_v52, %v766_v52 }
 0x13d   :  { %v445_v0 = vmul.f32 %v782_v18, %v782_v18 }
 0x13e   :  { %v494_v59 = vadd.f32 %v493_v2, %v431_v62  ;;  %v361_v6 = vadd.f32 %v360_v58, %v228_v14  ;;  %v446_v62 = vmul.f32 %v801_v36, %v801_v36 }
 0x140   :  { %v495_v10 = vadd.f32 %v494_v59, %v432_v8  ;;  %v362_v12 = vadd.f32 %v361_v6, %v231_v32  ;;  %v828_v29 = vpop.f32.mrf.mxu3  ;;  %v440_v32 = vmul.f32 %v744_v56, %v744_v56  ;;  %v447_v6 = vmul.f32 %v273_v9, %v273_v9 }
 0x142   :  { %v496_v16 = vadd.f32 %v495_v10, %v433_v13  ;;  %v363_v7 = vadd.f32 %v362_v12, %v234_v5 }
 0x144   :  { %v364_v19 = vadd.f32 %v363_v7, %v720_v34  ;;  %v497_v11 = vadd.f32 %v496_v16, %v434_v15 }
 0x146   :  { %v365_v14 = vadd.f32 %v364_v19, %v724_v39  ;;  %v498_v20 = vadd.f32 %v497_v11, %v435_v17  ;;  %v451_v11 = vmul.f32 %v734_v49, %v734_v49 }
 0x148   :  { %v366_v24 = vadd.f32 %v365_v14, %v728_v43  ;;  %v499_v25 = vadd.f32 %v498_v20, %v436_v41  ;;  %v318_v48 = vpop.f32.mrf.mxu3 }
 0x14a   :  { %v367_v28 = vadd.f32 %v366_v24, %v732_v47  ;;  %v500_v34 = vadd.f32 %v499_v25, %v437_v21  ;;  %v453_v21 = vmul.f32 %v746_v57, %v746_v57 }
 0x14c   :  { %v368_v39 = vadd.f32 %v367_v28, %v738_v51  ;;  %v501_v31 = vadd.f32 %v500_v34, %v438_v26  ;;  %v279_v51 = vpop.f32.mrf.mxu2  ;;  %v454_v26 = vmul.f32 %v752_v61, %v752_v61  ;;  %v455_v34 = vmul.f32 %v758_v4, %v758_v4 }
 0x14d   :  { %v449_v7 = vmul.f32 %v279_v51, %v279_v51 }
 0x14e   :  { %v369_v43 = vadd.f32 %v368_v39, %v744_v56  ;;  %v502_v33 = vadd.f32 %v501_v31, %v439_v37  ;;  %v456_v39 = vmul.f32 %v764_v27, %v764_v27 }
 0x150   :  { %v503_v42 = vadd.f32 %v502_v33, %v440_v32  ;;  %v370_v47 = vadd.f32 %v369_v43, %v750_v60  ;;  %v321_v13 = vpop.f32.mrf.mxu3  ;;  %v457_v32 = vmul.f32 %v768_v3, %v768_v3 }
 0x152   :  { %v371_v46 = vadd.f32 %v370_v47, %v756_v1  ;;  %v504_v40 = vadd.f32 %v503_v42, %v441_v35  ;;  %v459_v47 = vmul.f32 %v806_v44, %v806_v44 }
 0x154   :  { %v372_v45 = vadd.f32 %v371_v46, %v762_v22  ;;  %v505_v56 = vadd.f32 %v504_v40, %v442_v38  ;;  %v282_v8 = vpop.f32.mrf.mxu2  ;;  %v460_v46 = vmul.f32 %v814_v63, %v814_v63 }
 0x155   :  { %v450_v17 = vmul.f32 %v282_v8, %v282_v8 }
 0x156   :  { %v373_v54 = vadd.f32 %v372_v45, %v766_v52  ;;  %v506_v60 = vadd.f32 %v505_v56, %v443_v50  ;;  %v448_v52 = vmul.f32 %v276_v30, %v276_v30  ;;  %v462_v56 = vmul.f32 %v318_v48, %v318_v48 }
 0x158   :  { %v374_v1 = vadd.f32 %v373_v54, %v782_v18  ;;  %v507_v2 = vadd.f32 %v506_v60, %v444_v55 }
 0x15a   :  { %v375_v58 = vadd.f32 %v374_v1, %v801_v36  ;;  %v508_v22 = vadd.f32 %v507_v2, %v445_v0  ;;  %v463_v0 = vmul.f32 %v321_v13, %v321_v13 }
 0x15c   :  { %v509_v5 = vadd.f32 %v508_v22, %v446_v62  ;;  %v376_v59 = vadd.f32 %v375_v58, %v273_v9  ;;  %v452_v9 = vmul.f32 %v740_v53, %v740_v53 }
 0x15e   :  { %v510_v10 = vadd.f32 %v509_v5, %v447_v6  ;;  %v377_v12 = vadd.f32 %v376_v59, %v276_v30  ;;  %v324_v30 = vpop.f32.mrf.mxu3 }
 0x15f   :  { %v464_v58 = vmul.f32 %v324_v30, %v324_v30 }
 0x160   :  { %v511_v15 = vadd.f32 %v510_v10, %v448_v52  ;;  %v378_v16 = vadd.f32 %v377_v12, %v279_v51 }
 0x162   :  { %v512_v18 = vadd.f32 %v511_v15, %v449_v7  ;;  %v379_v19 = vadd.f32 %v378_v16, %v282_v8 }
 0x164   :  { %v380_v36 = vadd.f32 %v379_v19, %v734_v49  ;;  %v513_v41 = vadd.f32 %v512_v18, %v450_v17 }
 0x166   :  { %v381_v14 = vadd.f32 %v380_v36, %v740_v53  ;;  %v514_v20 = vadd.f32 %v513_v41, %v451_v11 }
 0x168   :  { %v382_v24 = vadd.f32 %v381_v14, %v746_v57  ;;  %v515_v25 = vadd.f32 %v514_v20, %v452_v9 }
 0x16a   :  { %v383_v28 = vadd.f32 %v382_v24, %v752_v61  ;;  %v516_v49 = vadd.f32 %v515_v25, %v453_v21  ;;  %v458_v61 = vmul.f32 %v787_v23, %v787_v23 }
 0x16c   :  { %v384_v37 = vadd.f32 %v383_v28, %v758_v4  ;;  %v517_v53 = vadd.f32 %v516_v49, %v454_v26  ;;  %v327_v4 = vpop.f32.mrf.mxu3 }
 0x16e   :  { %v385_v31 = vadd.f32 %v384_v37, %v764_v27  ;;  %v518_v57 = vadd.f32 %v517_v53, %v455_v34 }
 0x170   :  { %v519_v43 = vadd.f32 %v518_v57, %v456_v39  ;;  %v386_v33 = vadd.f32 %v385_v31, %v768_v3  ;;  %v461_v3 = vmul.f32 %v828_v29, %v828_v29 }
 0x172   :  { %v387_v35 = vadd.f32 %v386_v33, %v787_v23  ;;  %v520_v42 = vadd.f32 %v519_v43, %v457_v32 }
 0x174   :  { %v388_v38 = vadd.f32 %v387_v35, %v806_v44  ;;  %v521_v27 = vadd.f32 %v520_v42, %v458_v61  ;;  %v330_v44 = vpop.f32.mrf.mxu3 }
 0x175   :  { %v466_v5 = vmul.f32 %v330_v44, %v330_v44 }
 0x176   :  { %v389_v40 = vadd.f32 %v388_v38, %v814_v63  ;;  %v522_v51 = vadd.f32 %v521_v27, %v459_v47  ;;  %v465_v63 = vmul.f32 %v327_v4, %v327_v4 }
 0x178   :  { %v390_v50 = vadd.f32 %v389_v40, %v828_v29  ;;  %v523_v23 = vadd.f32 %v522_v51, %v460_v46 }
 0x17a   :  { %v391_v45 = vadd.f32 %v390_v50, %v318_v48  ;;  %v524_v55 = vadd.f32 %v523_v23, %v461_v3 }
 0x17c   :  { %v525_v54 = vadd.f32 %v524_v55, %v462_v56  ;;  %v392_v60 = vadd.f32 %v391_v45, %v321_v13 }
 0x17e   :  { %v526_v1 = vadd.f32 %v525_v54, %v463_v0  ;;  %v393_v2 = vadd.f32 %v392_v60, %v324_v30 }
 0x180   :  { %v527_v62 = vadd.f32 %v526_v1, %v464_v58  ;;  %v394_v22 = vadd.f32 %v393_v2, %v327_v4 }
 0x182   :  { %v528_v59 = vadd.f32 %v527_v62, %v465_v63  ;;  %v395_v6 = vadd.f32 %v394_v22, %v330_v44 }
 0x184   :  { %v396_v8 = vrot.slane %v395_v6, 4  ;;  %v529_v10 = vadd.f32 %v528_v59, %v466_v5 }
 0x186   :  { %v397_v29 = vadd.f32 %v396_v8, %v395_v6  ;;  %v530_v12 = vrot.slane %v529_v10, 4 }
 0x188   :  { %v398_v52 = vrot.slane %v397_v29, 2  ;;  %v531_v48 = vadd.f32 %v530_v12, %v529_v10 }
 0x18a   :  { %v399_v15 = vadd.f32 %v398_v52, %v397_v29  ;;  %v532_v16 = vrot.slane %v531_v48, 2 }
 0x18c   :  { %v400_v7 = vrot.slane %v399_v15, 1  ;;  %v533_v13 = vadd.f32 %v532_v16, %v531_v48 }
 0x18e   :  { %v401_v17 = vadd.f32 %v400_v7, %v399_v15  ;;  %v534_v18 = vrot.slane %v533_v13, 1 }
 0x190   :  { %402 = vst [vmem:[#allocation7] sm:$0x1] %v401_v17  ;;  %v535_v19 = vadd.f32 %v534_v18, %v533_v13 }
 0x192   :  { %536 = vst [vmem:[#allocation7 + $0x1] sm:$0x1] %v535_v19 }
 0x193   :  { %547 = dma.vmem_to_hbm [thread:$0]  %s543_s1, 32, %s545_s23, [#allocation4]  }
 0x194   :  { %684 = dma.done.wait [#allocation4], 32  }
 0x195   :  { %685 = vsyncadd [#allocation4], 4294967264 }
 0x196   :  { %552 = vsyncpa [#allocation3], 1 }
 0x197   :  { %553 = vsyncpa [#allocation6], 1 }
 0x198   :  { %554 = vsyncpa [#allocation4], 1 }

</bundles_post_ra>
